<compile_context>
chip_gen: v7x
topology: tpu7x:2x2x1
jax: 0.10.0
libtpu: 0.0.40
codegen_flags: <defaults>
</compile_context>

<pallas_src>
import jax
import jax.numpy as jnp
from jax.experimental import pallas as pl
from jax.experimental.pallas import tpu as pltpu


def _round_up(x, m):
    return ((x + m - 1) // m) * m


def _embed_ln_kernel(tok_ref, pos_ref, wtab_ref, ptab_ref, gamma_ref, beta_ref,
                     o_ref):
    # tok_ref, pos_ref: (TM, 1) int32 | wtab_ref: (Vp, H) | ptab_ref: (Lp, H)
    # gamma_ref, beta_ref: (1, H)     | o_ref: (TM, H)
    tm = tok_ref.shape[0]
    v = wtab_ref.shape[0]
    l = ptab_ref.shape[0]

    tok = tok_ref[...]                      # (TM, 1) int32
    pos = pos_ref[...]                      # (TM, 1) int32

    # In-kernel row gather via one-hot matmul on the MXU (tables stay resident
    # in VMEM; HIGHEST precision keeps the f32 rows exact).
    onehot_w = (tok == jax.lax.broadcasted_iota(jnp.int32, (tm, v), 1)
                ).astype(jnp.float32)       # (TM, Vp)
    onehot_p = (pos == jax.lax.broadcasted_iota(jnp.int32, (tm, l), 1)
                ).astype(jnp.float32)       # (TM, Lp)

    dn = (((1,), (0,)), ((), ()))
    w = jax.lax.dot_general(onehot_w, wtab_ref[...].astype(jnp.float32), dn,
                            precision=jax.lax.Precision.HIGHEST,
                            preferred_element_type=jnp.float32)
    p = jax.lax.dot_general(onehot_p, ptab_ref[...].astype(jnp.float32), dn,
                            precision=jax.lax.Precision.HIGHEST,
                            preferred_element_type=jnp.float32)

    x = w + p                               # (TM, H) f32
    mean = jnp.mean(x, axis=-1, keepdims=True)
    xc = x - mean
    var = jnp.mean(xc * xc, axis=-1, keepdims=True)
    inv = jax.lax.rsqrt(var + 1e-8)         # source module uses eps=1e-8
    y = xc * inv * gamma_ref[...] + beta_ref[...]
    # TODO(synk): dropout with p > 0 would need pltpu.prng_*; p = 0.0 -> identity.
    o_ref[...] = y.astype(o_ref.dtype)


def word_and_positional_embedding(tokens, word_table, pos_table, gamma, beta,
                                  *, tm=256):
    """tokens: (B, T) int32. Returns (B, T, H) float32."""
    B, T = tokens.shape
    V, H = word_table.shape
    L, _ = pos_table.shape
    assert T <= L, "sequence length exceeds max_caption_length"

    N = B * T
    TM = _round_up(min(tm, _round_up(N, 8)), 8)   # tile of tokens per grid step
    N_pad = _round_up(N, TM)
    V_pad = _round_up(V, 8)
    L_pad = _round_up(L, 8)

    # Flattened token ids and sequence positions, padded to N_pad (pad rows are
    # valid indices; their outputs are sliced away).
    tok_flat = jnp.zeros((N_pad,), jnp.int32).at[:N].set(
        tokens.reshape(-1).astype(jnp.int32))
    pos_flat = jnp.zeros((N_pad,), jnp.int32).at[:N].set(
        jnp.arange(N, dtype=jnp.int32) % T)
    tok2d = tok_flat.reshape(N_pad, 1)
    pos2d = pos_flat.reshape(N_pad, 1)

    # Row-pad tables to a multiple of 8 sublanes (padded rows never selected).
    wtab = jnp.zeros((V_pad, H), jnp.float32).at[:V].set(
        word_table.astype(jnp.float32))
    ptab = jnp.zeros((L_pad, H), jnp.float32).at[:L].set(
        pos_table.astype(jnp.float32))
    gamma2d = gamma.reshape(1, H).astype(jnp.float32)
    beta2d = beta.reshape(1, H).astype(jnp.float32)

    num_tiles = N_pad // TM

    # VMEM budget: resident tables + double-buffered id/out tiles + margin.
    est = 4 * (2 * (V_pad + L_pad) * H          # tables (x2 headroom)
               + 2 * 2 * TM * 128               # tok/pos blocks (lane-padded)
               + 2 * TM * H                     # output blocks
               + TM * (V_pad + L_pad))          # one-hot intermediates
    vmem_limit = int(min(max(est, 32 * 1024 * 1024), 96 * 1024 * 1024))

    out_flat = pl.pallas_call(
        _embed_ln_kernel,
        out_shape=jax.ShapeDtypeStruct((N_pad, H), jnp.float32),
        grid=(num_tiles,),
        in_specs=[
            pl.BlockSpec((TM, 1), lambda i: (i, 0)),      # token ids
            pl.BlockSpec((TM, 1), lambda i: (i, 0)),      # position ids
            pl.BlockSpec((V_pad, H), lambda i: (0, 0)),   # word table (resident)
            pl.BlockSpec((L_pad, H), lambda i: (0, 0)),   # pos table (resident)
            pl.BlockSpec((1, H), lambda i: (0, 0)),       # LN gamma
            pl.BlockSpec((1, H), lambda i: (0, 0)),       # LN beta
        ],
        out_specs=pl.BlockSpec((TM, H), lambda i: (i, 0)),
        compiler_params=pltpu.CompilerParams(
            dimension_semantics=("parallel",),
            vmem_limit_bytes=vmem_limit),
    )(tok2d, pos2d, wtab, ptab, gamma2d, beta2d)

    return out_flat[:N].reshape(B, T, H)


def _reference(tokens, word_table, pos_table, gamma, beta):
    B, T = tokens.shape
    w = word_table[tokens]                       # (B, T, H)
    p = pos_table[jnp.arange(T)][None, :, :]     # (1, T, H)
    x = w + p
    mean = jnp.mean(x, axis=-1, keepdims=True)
    var = jnp.mean((x - mean) ** 2, axis=-1, keepdims=True)
    return (x - mean) / jnp.sqrt(var + 1e-8) * gamma + beta


if __name__ == "__main__":
    vocab_size = 32
    hidden_size = 128
    max_caption_length = 30
    batch, seq = 2, 8

    key = jax.random.PRNGKey(0)
    k_tok, k_w, k_p = jax.random.split(key, 3)

    tokens = jax.random.randint(k_tok, (batch, seq), 0, vocab_size,
                                dtype=jnp.int32)
    word_table = jax.random.normal(k_w, (vocab_size, hidden_size), jnp.float32)
    pos_table = jax.random.normal(k_p, (max_caption_length, hidden_size),
                                  jnp.float32)
    gamma = jnp.ones((hidden_size,), jnp.float32)   # nn.LayerNorm default init
    beta = jnp.zeros((hidden_size,), jnp.float32)

    out = word_and_positional_embedding(tokens, word_table, pos_table, gamma,
                                        beta)
    out = jax.block_until_ready(out)

    ref = _reference(tokens, word_table, pos_table, gamma, beta)
    assert out.shape == (batch, seq, hidden_size)
    max_err = float(jnp.max(jnp.abs(out - ref)))
    assert jnp.allclose(out, ref, atol=1e-4, rtol=1e-4), (
        f"mismatch vs reference (max abs err {max_err})")

    print("KERNEL_OK")
</pallas_src>

<mosaic_0001>
module attributes {stable_mosaic.version = 11 : i64} {
  func.func @_embed_ln_kernel(%arg0: i32, %arg1: memref<16x1xi32, #tpu.memory_space<vmem>>, %arg2: memref<16x1xi32, #tpu.memory_space<vmem>>, %arg3: memref<32x128xf32, #tpu.memory_space<vmem>>, %arg4: memref<32x128xf32, #tpu.memory_space<vmem>>, %arg5: memref<1x128xf32, #tpu.memory_space<vmem>>, %arg6: memref<1x128xf32, #tpu.memory_space<vmem>>, %arg7: memref<16x128xf32, #tpu.memory_space<vmem>>) attributes {dimension_semantics = [#tpu.dimension_semantics<parallel>], iteration_bounds = array<i64: 1>, scalar_prefetch = 0 : i64, scratch_operands = 0 : i64, tpu.core_type = #tpu.core_type<tc>, window_params = [{transform_indices = @transform_0, window_bounds = array<i64: 16, 1>}, {transform_indices = @transform_1, window_bounds = array<i64: 16, 1>}, {pipeline_mode = #tpu.pipeline_mode<synchronous>, transform_indices = @transform_2, window_bounds = array<i64: 32, 128>}, {pipeline_mode = #tpu.pipeline_mode<synchronous>, transform_indices = @transform_3, window_bounds = array<i64: 32, 128>}, {pipeline_mode = #tpu.pipeline_mode<synchronous>, transform_indices = @transform_4, window_bounds = array<i64: 1, 128>}, {pipeline_mode = #tpu.pipeline_mode<synchronous>, transform_indices = @transform_5, window_bounds = array<i64: 1, 128>}, {transform_indices = @transform_6, window_bounds = array<i64: 16, 128>}]} {
    %c0 = arith.constant 0 : index
    %c0_0 = arith.constant 0 : index
    %0 = vector.load %arg1[%c0, %c0_0] : memref<16x1xi32, #tpu.memory_space<vmem>>, vector<16x1xi32>
    %c0_1 = arith.constant 0 : index
    %c0_2 = arith.constant 0 : index
    %1 = vector.load %arg2[%c0_1, %c0_2] : memref<16x1xi32, #tpu.memory_space<vmem>>, vector<16x1xi32>
    %2 = tpu.iota {dimensions = array<i32: 1>} : vector<16x32xi32>
    %3 = vector.broadcast %0 : vector<16x1xi32> to vector<16x32xi32>
    %4 = arith.cmpi eq, %3, %2 : vector<16x32xi32>
    %5 = arith.extui %4 : vector<16x32xi1> to vector<16x32xi32>
    %6 = arith.sitofp %5 : vector<16x32xi32> to vector<16x32xf32>
    %7 = tpu.iota {dimensions = array<i32: 1>} : vector<16x32xi32>
    %8 = vector.broadcast %1 : vector<16x1xi32> to vector<16x32xi32>
    %9 = arith.cmpi eq, %8, %7 : vector<16x32xi32>
    %10 = arith.extui %9 : vector<16x32xi1> to vector<16x32xi32>
    %11 = arith.sitofp %10 : vector<16x32xi32> to vector<16x32xf32>
    %c0_3 = arith.constant 0 : index
    %c0_4 = arith.constant 0 : index
    %12 = vector.load %arg3[%c0_3, %c0_4] : memref<32x128xf32, #tpu.memory_space<vmem>>, vector<32x128xf32>
    %cst = arith.constant dense<0.000000e+00> : vector<16x128xf32>
    %13 = tpu.matmul %6, %12, %cst {dimension_numbers = #tpu.dot_dimension_numbers<[1], [0], [0], [1], [0, 0, 1, 1], [], []>, precision = #tpu.contract_precision<fp32>} : vector<16x32xf32>, vector<32x128xf32>, vector<16x128xf32> -> vector<16x128xf32>
    %c0_5 = arith.constant 0 : index
    %c0_6 = arith.constant 0 : index
    %14 = vector.load %arg4[%c0_5, %c0_6] : memref<32x128xf32, #tpu.memory_space<vmem>>, vector<32x128xf32>
    %cst_7 = arith.constant dense<0.000000e+00> : vector<16x128xf32>
    %15 = tpu.matmul %11, %14, %cst_7 {dimension_numbers = #tpu.dot_dimension_numbers<[1], [0], [0], [1], [0, 0, 1, 1], [], []>, precision = #tpu.contract_precision<fp32>} : vector<16x32xf32>, vector<32x128xf32>, vector<16x128xf32> -> vector<16x128xf32>
    %16 = arith.addf %13, %15 : vector<16x128xf32>
    %cst_8 = arith.constant dense<0.000000e+00> : vector<16xf32>
    %17 = vector.multi_reduction <add>, %16, %cst_8 [1] : vector<16x128xf32> to vector<16xf32>
    %18 = vector.shape_cast %17 : vector<16xf32> to vector<16x1xf32>
    %cst_9 = arith.constant 1.280000e+02 : f32
    %19 = vector.broadcast %cst_9 : f32 to vector<16x1xf32>
    %20 = arith.divf %18, %19 : vector<16x1xf32>
    %21 = vector.broadcast %20 : vector<16x1xf32> to vector<16x128xf32>
    %22 = arith.subf %16, %21 : vector<16x128xf32>
    %23 = arith.mulf %22, %22 : vector<16x128xf32>
    %cst_10 = arith.constant dense<0.000000e+00> : vector<16xf32>
    %24 = vector.multi_reduction <add>, %23, %cst_10 [1] : vector<16x128xf32> to vector<16xf32>
    %25 = vector.shape_cast %24 : vector<16xf32> to vector<16x1xf32>
    %cst_11 = arith.constant 1.280000e+02 : f32
    %26 = vector.broadcast %cst_11 : f32 to vector<16x1xf32>
    %27 = arith.divf %25, %26 : vector<16x1xf32>
    %cst_12 = arith.constant 9.99999993E-9 : f32
    %28 = vector.broadcast %cst_12 : f32 to vector<16x1xf32>
    %29 = arith.addf %27, %28 : vector<16x1xf32>
    %30 = math.rsqrt %29 : vector<16x1xf32>
    %31 = vector.broadcast %30 : vector<16x1xf32> to vector<16x128xf32>
    %32 = arith.mulf %22, %31 : vector<16x128xf32>
    %c0_13 = arith.constant 0 : index
    %c0_14 = arith.constant 0 : index
    %33 = vector.load %arg5[%c0_13, %c0_14] : memref<1x128xf32, #tpu.memory_space<vmem>>, vector<1x128xf32>
    %34 = vector.broadcast %33 : vector<1x128xf32> to vector<16x128xf32>
    %35 = arith.mulf %32, %34 : vector<16x128xf32>
    %c0_15 = arith.constant 0 : index
    %c0_16 = arith.constant 0 : index
    %36 = vector.load %arg6[%c0_15, %c0_16] : memref<1x128xf32, #tpu.memory_space<vmem>>, vector<1x128xf32>
    %37 = vector.broadcast %36 : vector<1x128xf32> to vector<16x128xf32>
    %38 = arith.addf %35, %37 : vector<16x128xf32>
    %c0_17 = arith.constant 0 : index
    %c0_18 = arith.constant 0 : index
    %39 = vector.load %arg7[%c0_17, %c0_18] : memref<16x128xf32, #tpu.memory_space<vmem>>, vector<16x128xf32>
    tpu.vector_store %arg7[%c0_17, %c0_18], %38 {strides = array<i32>} : memref<16x128xf32, #tpu.memory_space<vmem>>, vector<16x128xf32>,
    return
  }
  func.func @transform_0(%arg0: i32) -> (i32, i32) {
    %c0_i32 = arith.constant 0 : i32
    %c0_i32_0 = arith.constant 0 : i32
    return %arg0, %c0_i32 : i32, i32
  }
  func.func @transform_1(%arg0: i32) -> (i32, i32) {
    %c0_i32 = arith.constant 0 : i32
    %c0_i32_0 = arith.constant 0 : i32
    return %arg0, %c0_i32 : i32, i32
  }
  func.func @transform_2(%arg0: i32) -> (i32, i32) {
    %c0_i32 = arith.constant 0 : i32
    %c0_i32_0 = arith.constant 0 : i32
    %c0_i32_1 = arith.constant 0 : i32
    return %c0_i32, %c0_i32_0 : i32, i32
  }
  func.func @transform_3(%arg0: i32) -> (i32, i32) {
    %c0_i32 = arith.constant 0 : i32
    %c0_i32_0 = arith.constant 0 : i32
    %c0_i32_1 = arith.constant 0 : i32
    return %c0_i32, %c0_i32_0 : i32, i32
  }
  func.func @transform_4(%arg0: i32) -> (i32, i32) {
    %c0_i32 = arith.constant 0 : i32
    %c0_i32_0 = arith.constant 0 : i32
    %c0_i32_1 = arith.constant 0 : i32
    return %c0_i32, %c0_i32_0 : i32, i32
  }
  func.func @transform_5(%arg0: i32) -> (i32, i32) {
    %c0_i32 = arith.constant 0 : i32
    %c0_i32_0 = arith.constant 0 : i32
    %c0_i32_1 = arith.constant 0 : i32
    return %c0_i32, %c0_i32_0 : i32, i32
  }
  func.func @transform_6(%arg0: i32) -> (i32, i32) {
    %c0_i32 = arith.constant 0 : i32
    %c0_i32_0 = arith.constant 0 : i32
    return %arg0, %c0_i32 : i32, i32
  }
}

</mosaic_0001>

<bundles_post_ra>
// kernel: tpu_custom_call.1
= control target key start
LH: loop header
LB: loop body
LE: loop exit
PB: predicated region body
PF: predicated region fallthrough
CT: control target
= control target key end

     0   :  { %11 = vsyncpa [#allocation3], 0  ;;  %s1812_s0 = inlined_call_operand.vmem [shape: s32[16,1], index: 0, kind: input, shape index: {}]   ;;  %s1813_s1 = inlined_call_operand.vmem [shape: s32[16,1], index: 1, kind: input, shape index: {}]   ;;  %s1814_s2 = inlined_call_operand.vmem [shape: f32[32,128], index: 2, kind: input, shape index: {}]   ;;  %s1815_s3 = inlined_call_operand.hbm [shape: f32[32,128], index: 3, kind: input, shape index: {}]   ;;  %s1816_s4 = inlined_call_operand.vmem [shape: f32[1,128], index: 4, kind: input, shape index: {}]   ;;  %s1817_s5 = inlined_call_operand.vmem [shape: f32[1,128], index: 5, kind: input, shape index: {}]   ;;  %s1818_s6 = inlined_call_operand.hbm [shape: f32[16,128], index: 6, kind: output, shape index: {}]  }
   0x1   :  { %12 = vsyncpa [#allocation4], 0  ;;  %s1605_s21 = smov [#allocation2]   ;;  %s1557_s25 = scalar_lea.hbm %s1815_s3, 512 }
   0x2   :  { %s24_s22 = sshll.u32 %s1605_s21, 4  ;;  %p1558_p0 = scmp.ne.s32.totalorder %s1815_s3, %s1557_s25  ;;  %s25_s22 = int_to_ptr.vmem [resolvable:$true] %s24_s22 }
   0x3   :  { %p1561_p1 = scmp.lt.u32.totalorder %s1557_s25, %s1815_s3 }
   0x5   :  { %p1563_p2 = pnand %p1561_p1, %p1558_p0 }
   0x7   :  { %1566 = shalt.err (!%p1563_p2)
}
   0x8   :  { %s1567_s30 = scalar_lea.vmem %s25_s22, 512  ;;  %p1572_p4 = scmp.lt.s32.totalorder %s25_s22, %s25_s22 }
   0x9   :  { %p1568_p3 = scmp.ne.s32.totalorder %s25_s22, %s1567_s30  ;;  %p1573_p5 = scmp.lt.s32.totalorder %s1567_s30, %s1567_s30 }
   0xb   :  { %p1574_p6 = por %p1573_p5, %p1572_p4 }
   0xd   :  { %p1575_p7 = pnand %p1574_p6, %p1568_p3 }
   0xf   :  { %1578 = shalt.err (!%p1575_p7)
}
  0x10   :  { %s1606_s7 = smov 128   ;;  %s1607_s8 = smov 8  }
  0x11   :  { %30 = dma.hbm_to_vmem [thread:$0]  %s1815_s3, 512, %s25_s22, [#allocation3], %s1606_s7, %s1606_s7, %s1607_s8  }
  0x12   :  { %1601 = dma.done.wait [#allocation3], 512  }
  0x13   :  { %1602 = vsyncadd [#allocation3], 4294966784  ;;  %v1608_v0 = vmov 0   ;;  %v39_v1 = vld [vmem:[%s1812_s0 + $0x8] sm:$0xff]  ;;  %v38_v2 = vld [vmem:[%s1812_s0] sm:$0xff]  ;;  %vm76_vm0 = vcmask 261120  }
  0x14   :  { %1552 = vset.pattern.permute.xlu1 %v1608_v0  ;;  %1551 = vset.pattern.permute.xlu0 %v1608_v0  ;;  %v68_v3 = vld [vmem:[%s1814_s2] sm:$0xff]  ;;  %v69_v4 = vld [vmem:[%s1814_s2 + $0x8] sm:$0xff]  ;;  %v72_v10 = vld [vmem:[#allocation2] sm:$0xff]  ;;  %s1610_s27 = smov [#allocation5]  }
  0x15   :  { %48 = vperm.xlu1 %1552, %v39_v1   ;;  %45 = vperm.xlu0 %1551, %v38_v2   ;;  %v41_v5 = vld [vmem:[%s1813_s1 + $0x8] sm:$0xff]  ;;  %v40_v6 = vld [vmem:[%s1813_s1] sm:$0xff]  ;;  %v618_v7 = vand.u32 4294901760, %v68_v3  ;;  %v621_v8 = vand.u32 4294901760, %v69_v4  ;;  %v73_v11 = vld [vmem:[#allocation2 + $0x8] sm:$0xff]  ;;  %v84_v15 = vand.u32 4294901760, %v72_v10 }
  0x16   :  { %v70_v12 = vld [vmem:[%s1814_s2 + $0x10] sm:$0xff]  ;;  %v87_v16 = vand.u32 4294901760, %v73_v11  ;;  %v71_v17 = vld [vmem:[%s1814_s2 + $0x18] sm:$0xff]  ;;  %v74_v27 = vld [vmem:[#allocation2 + $0x10] sm:$0xff]  ;;  %s1193_s28 = sshll.u32 %s1610_s27, 4  ;;  %s1194_s28 = int_to_ptr.vmem [resolvable:$true] %s1193_s28 }
  0x17   :  { %v1679_v9 = vpack.c.bf16 %v621_v8, %v618_v7  ;;  %v1684_v13 = vsub.f32 %v68_v3, %v618_v7  ;;  %v1686_v14 = vsub.f32 %v69_v4, %v621_v8  ;;  %v624_v18 = vand.u32 4294901760, %v70_v12  ;;  %v75_v28 = vld [vmem:[#allocation2 + $0x18] sm:$0xff]  ;;  %s1579_s29 = scalar_lea.vmem %s1194_s28, 256  ;;  %p1584_p9 = scmp.lt.s32.totalorder %s1194_s28, %s1194_s28 }
  0x18   :  { %v627_v19 = vand.u32 4294901760, %v71_v17  ;;  %v1695_v22 = vpack.c.bf16 %v87_v16, %v84_v15  ;;  %v174_v23 = vsub.f32 %v72_v10, %v84_v15  ;;  %v181_v24 = vsub.f32 %v73_v11, %v87_v16  ;;  %p1580_p8 = scmp.ne.s32.totalorder %s1194_s28, %s1579_s29  ;;  %p1585_p10 = scmp.lt.s32.totalorder %s1579_s29, %s1579_s29 }
  0x19   :  { %60 = vperm.xlu1 %1552, %v41_v5   ;;  %57 = vperm.xlu0 %1551, %v40_v6   ;;  %v709_v20 = vand.u32 4294901760, %v1684_v13  ;;  %v716_v21 = vand.u32 4294901760, %v1686_v14  ;;  %v722_v25 = vsub.f32 %v70_v12, %v624_v18  ;;  %v90_v32 = vand.u32 4294901760, %v74_v27 }
  0x1a   :  { %1476 = vmatprep.subr.bf16.mxu0 %v1679_v9  ;;  %v1697_v26 = vpack.c.bf16 %v627_v19, %v624_v18  ;;  %v729_v31 = vsub.f32 %v71_v17, %v627_v19  ;;  %1428 = vmatprep.subr.bf16.mxu1 %v1695_v22  ;;  %v93_v33 = vand.u32 4294901760, %v75_v28  ;;  %v175_v34 = vand.u32 4294901760, %v174_v23  ;;  %p1586_p11 = por %p1585_p10, %p1584_p9 }
  0x1b   :  { %1478 = vmatpush3.bf16.msra.mxu0 %v1679_v9  ;;  %v710_v29 = vsub.f32 %v1684_v13, %v709_v20  ;;  %v717_v30 = vsub.f32 %v1686_v14, %v716_v21  ;;  %v182_v35 = vand.u32 4294901760, %v181_v24  ;;  %1430 = vmatpush3.bf16.msra.mxu1 %v1695_v22  ;;  %v723_v38 = vand.u32 4294901760, %v722_v25 }
  0x1c   :  { %1480 = vmatprep.subr.bf16.mxu0 %v1697_v26  ;;  %v730_v39 = vand.u32 4294901760, %v729_v31  ;;  %v1705_v40 = vpack.c.bf16 %v93_v33, %v90_v32  ;;  %v176_v41 = vsub.f32 %v174_v23, %v175_v34  ;;  %v188_v46 = vsub.f32 %v74_v27, %v90_v32  ;;  %p1587_p12 = pnand %p1586_p11, %p1580_p8 }
  0x1d   :  { %v711_v36 = vand.u32 4294901760, %v710_v29  ;;  %v718_v37 = vand.u32 4294901760, %v717_v30  ;;  %v183_v42 = vsub.f32 %v181_v24, %v182_v35  ;;  %v724_v44 = vsub.f32 %v722_v25, %v723_v38 }
  0x1e   :  { %v731_v45 = vsub.f32 %v729_v31, %v730_v39  ;;  %1432 = vmatprep.subr.bf16.mxu1 %v1705_v40  ;;  %v177_v47 = vand.u32 4294901760, %v176_v41  ;;  %v195_v49 = vsub.f32 %v75_v28, %v93_v33  ;;  %v189_v52 = vand.u32 4294901760, %v188_v46 }
  0x1f   :  { %1482 = vmatpush3.bf16.msra.mxu0 %v1697_v26  ;;  %v1707_v43 = vpack.c.bf16 %v718_v37, %v711_v36  ;;  %v184_v48 = vand.u32 4294901760, %v183_v42  ;;  %1434 = vmatpush3.bf16.msra.mxu1 %v1705_v40  ;;  %v725_v50 = vand.u32 4294901760, %v724_v44  ;;  %v1491_v60 = vpack.c.bf16 %v1686_v14, %v1684_v13 }
  0x20   :  { %v732_v51 = vand.u32 4294901760, %v731_v45  ;;  %v196_v54 = vand.u32 4294901760, %v195_v49  ;;  %v190_v56 = vsub.f32 %v188_v46, %v189_v52  ;;  %v1443_v62 = vpack.c.bf16 %v181_v24, %v174_v23 }
  0x21   :  { %1484 = vmatprep.subr.bf16.mxu0 %v1707_v43  ;;  %v1435_v53 = vpack.c.bf16 %v184_v48, %v177_v47  ;;  %v1495_v63 = vpack.c.bf16 %v729_v31, %v722_v25  ;;  %v1714_v0 = vpack.c.bf16 %v195_v49, %v188_v46  ;;  %v1716_v1 = vpack.c.bf16 %v716_v21, %v709_v20 }
  0x22   :  { %v1487_v55 = vpack.c.bf16 %v732_v51, %v725_v50  ;;  %v197_v57 = vsub.f32 %v195_v49, %v196_v54  ;;  %v191_v58 = vand.u32 4294901760, %v190_v56  ;;  %v1718_v2 = vpack.c.bf16 %v182_v35, %v175_v34 }
  0x23   :  { %1436 = vmatprep.subr.bf16.mxu1 %v1435_v53  ;;  %v1720_v3 = vpack.c.bf16 %v730_v39, %v723_v38  ;;  %v1722_v4 = vpack.c.bf16 %v196_v54, %v189_v52  ;;  %v42_v5 = vlaneseq  ;;  %v1609_v10 = vmov 0.0  }
  0x24   :  { %v198_v59 = vand.u32 4294901760, %v197_v57  ;;  %v1221_v57 = vld [vmem:[%s1816_s4] ss:$0 sm:$0xff] }
  0x25   :  { %v43_v6 = vand.u32 127, %v42_v5 }
  0x26   :  { %v1439_v61 = vpack.c.bf16 %v198_v59, %v191_v58  ;;  %v1222_v59 = vld [vmem:[%s1817_s5] ss:$0 sm:$0xff] }
  0x94   :  { %v49_v7 = vpop.permute.xlu1 %48  ;;  %v46_v8 = vpop.permute.xlu0 %45 }
  0x95   :  { %vm51_vm1 = vcmp.eq.s32.totalorder %v49_v7, %v43_v6  ;;  %vm50_vm2 = vcmp.eq.s32.totalorder %v46_v8, %v43_v6 }
  0x96   :  { %v1724_v11 = vsel %vm51_vm1, 1.0, %v1609_v10  ;;  %v1726_v12 = vsel %vm50_vm2, 1.0, %v1609_v10 }
  0x97   :  { %v615_v13 = vsel %vm76_vm0, %v1724_v11, 0  ;;  %v612_v14 = vsel %vm76_vm0, %v1726_v12, 0 }
  0x98   :  { %v697_v15 = vsub.f32 %v615_v13, %v615_v13  ;;  %v61_v16 = vpop.permute.xlu1 %60  ;;  %v58_v17 = vpop.permute.xlu0 %57  ;;  %v687_v18 = vsub.f32 %v612_v14, %v612_v14 }
  0x99   :  { %vm63_vm3 = vcmp.eq.s32.totalorder %v61_v16, %v43_v6  ;;  %vm62_vm4 = vcmp.eq.s32.totalorder %v58_v17, %v43_v6 }
  0x9a   :  { %v1732_v19 = vsel %vm63_vm3, 1.0, %v1609_v10  ;;  %v1734_v20 = vsel %vm62_vm4, 1.0, %v1609_v10  ;;  %v688_v21 = vand.u32 4294901760, %v687_v18  ;;  %v698_v23 = vand.u32 4294901760, %v697_v15 }
  0x9b   :  { %v81_v24 = vsel %vm76_vm0, %v1732_v19, 0  ;;  %v78_v25 = vsel %vm76_vm0, %v1734_v20, 0 }
  0x9c   :  { %v163_v27 = vsub.f32 %v81_v24, %v81_v24  ;;  %v689_v28 = vsub.f32 %v687_v18, %v688_v21  ;;  %v699_v29 = vsub.f32 %v697_v15, %v698_v23  ;;  %v153_v30 = vsub.f32 %v78_v25, %v78_v25 }
  0x9e   :  { %v690_v31 = vand.u32 4294901760, %v689_v28  ;;  %v700_v32 = vand.u32 4294901760, %v699_v29  ;;  %v154_v33 = vand.u32 4294901760, %v153_v30  ;;  %v164_v34 = vand.u32 4294901760, %v163_v27 }
  0xa0   :  { %1369 = vmatprep.mubr.f32.mxu0 %v690_v31  ;;  %v155_v35 = vsub.f32 %v153_v30, %v154_v33  ;;  %v165_v36 = vsub.f32 %v163_v27, %v164_v34 }
  0xa1   :  { %1370 = vmatmul.mubr.f32.vlgmr.msra.gmra.mrb[0].mxu0 %v700_v32 }
  0xa2   :  { %1486 = vmatpush3.bf16.msra.mxu0 %v1707_v43  ;;  %1380 = vmatprep.mubr.msk.f32.mxu0 %vm76_vm0, %v1726_v12  ;;  %v156_v37 = vand.u32 4294901760, %v155_v35  ;;  %v166_v38 = vand.u32 4294901760, %v165_v36 }
  0xa3   :  { %1488 = vmatprep.subr.bf16.mxu0 %v1487_v55 }
  0xa4   :  { %1303 = vmatprep.mubr.f32.mxu1 %v156_v37 }
  0xa5   :  { %1304 = vmatmul.mubr.f32.vlgmr.msra.gmra.mrb[0].mxu1 %v166_v38 }
  0xa6   :  { %1438 = vmatpush3.bf16.msra.mxu1 %v1435_v53  ;;  %1314 = vmatprep.mubr.msk.f32.mxu1 %vm76_vm0, %v1734_v20 }
  0xa7   :  { %1490 = vmatpush3.bf16.msra.mxu0 %v1487_v55  ;;  %1440 = vmatprep.subr.bf16.mxu1 %v1439_v61 }
  0xa8   :  { %1492 = vmatprep.subr.bf16.mxu0 %v1491_v60 }
  0xaa   :  { %1442 = vmatpush3.bf16.msra.mxu1 %v1439_v61  ;;  %1381 = vmatmul.mubr.msk.f32.vlgmr.msra.gmra.mrb[0].mxu0 %vm76_vm0, %v1724_v11 }
  0xab   :  { %1494 = vmatpush3.bf16.msra.mxu0 %v1491_v60  ;;  %1391 = vmatprep.mubr.f32.mxu0 %v687_v18 }
  0xac   :  { %1444 = vmatprep.subr.bf16.mxu1 %v1443_v62  ;;  %1496 = vmatprep.subr.bf16.mxu0 %v1495_v63 }
  0xad   :  { %1315 = vmatmul.mubr.msk.f32.vlgmr.msra.gmra.mrb[0].mxu1 %vm76_vm0, %v1732_v19 }
  0xae   :  { %1446 = vmatpush3.bf16.msra.mxu1 %v1443_v62  ;;  %1325 = vmatprep.mubr.f32.mxu1 %v153_v30 }
  0xaf   :  { %1498 = vmatpush3.bf16.msra.mxu0 %v1495_v63  ;;  %1448 = vmatprep.subr.bf16.mxu1 %v1714_v0 }
  0xb0   :  { %1500 = vmatprep.subr.bf16.mxu0 %v1679_v9 }
  0xb2   :  { %1450 = vmatpush3.bf16.msra.mxu1 %v1714_v0  ;;  %1392 = vmatmul.mubr.f32.vlgmr.msra.gmra.mrb[0].mxu0 %v697_v15 }
  0xb3   :  { %1502 = vmatpush3.bf16.msra.mxu0 %v1679_v9  ;;  %1402 = vmatprep.mubr.f32.mxu0 %v688_v21 }
  0xb4   :  { %1452 = vmatprep.subr.bf16.mxu1 %v1695_v22  ;;  %1504 = vmatprep.subr.bf16.mxu0 %v1697_v26 }
  0xb5   :  { %1326 = vmatmul.mubr.f32.vlgmr.msra.gmra.mrb[0].mxu1 %v163_v27 }
  0xb6   :  { %1454 = vmatpush3.bf16.msra.mxu1 %v1695_v22  ;;  %1336 = vmatprep.mubr.f32.mxu1 %v154_v33 }
  0xb7   :  { %1506 = vmatpush3.bf16.msra.mxu0 %v1697_v26  ;;  %1456 = vmatprep.subr.bf16.mxu1 %v1705_v40 }
  0xb8   :  { %1508 = vmatprep.subr.bf16.mxu0 %v1716_v1 }
  0xba   :  { %1458 = vmatpush3.bf16.msra.mxu1 %v1705_v40  ;;  %1403 = vmatmul.mubr.f32.vlgmr.msra.gmra.mrb[0].mxu0 %v698_v23 }
  0xbb   :  { %1510 = vmatpush3.bf16.msra.mxu0 %v1716_v1  ;;  %1413 = vmatprep.mubr.msk.f32.mxu0 %vm76_vm0, %v1726_v12 }
  0xbc   :  { %1460 = vmatprep.subr.bf16.mxu1 %v1718_v2  ;;  %1512 = vmatprep.subr.bf16.mxu0 %v1720_v3 }
  0xbd   :  { %1337 = vmatmul.mubr.f32.vlgmr.msra.gmra.mrb[0].mxu1 %v164_v34 }
  0xbe   :  { %1462 = vmatpush3.bf16.msra.mxu1 %v1718_v2  ;;  %1347 = vmatprep.mubr.msk.f32.mxu1 %vm76_vm0, %v1734_v20 }
  0xbf   :  { %1514 = vmatpush3.bf16.msra.mxu0 %v1720_v3  ;;  %1464 = vmatprep.subr.bf16.mxu1 %v1722_v4 }
  0xc0   :  { %1516 = vmatprep.subr.bf16.mxu0 %v1679_v9 }
  0xc2   :  { %1466 = vmatpush3.bf16.msra.mxu1 %v1722_v4  ;;  %1414 = vmatmul.mubr.msk.f32.vlgmr.msra.gmra.mrb[0].mxu0 %vm76_vm0, %v1724_v11 }
  0xc3   :  { %1518 = vmatpush3.bf16.msra.mxu0 %v1679_v9  ;;  %1424 = vmatprep.mubr.msk.f32.mxu0 %vm76_vm0, %v1726_v12 }
  0xc4   :  { %1468 = vmatprep.subr.bf16.mxu1 %v1695_v22  ;;  %1520 = vmatprep.subr.bf16.mxu0 %v1697_v26 }
  0xc5   :  { %1348 = vmatmul.mubr.msk.f32.vlgmr.msra.gmra.mrb[0].mxu1 %vm76_vm0, %v1732_v19 }
  0xc6   :  { %1470 = vmatpush3.bf16.msra.mxu1 %v1695_v22  ;;  %1358 = vmatprep.mubr.msk.f32.mxu1 %vm76_vm0, %v1734_v20 }
  0xc7   :  { %1522 = vmatpush3.bf16.msra.mxu0 %v1697_v26  ;;  %1472 = vmatprep.subr.bf16.mxu1 %v1705_v40 }
  0xca   :  { %1474 = vmatpush3.bf16.msra.mxu1 %v1705_v40  ;;  %1425 = vmatmul.mubr.msk.f32.vlgmr.msra.gmra.mrb[0].mxu0 %vm76_vm0, %v1724_v11 }
  0xcd   :  { %1359 = vmatmul.mubr.msk.f32.vlgmr.msra.gmra.mrb[0].mxu1 %vm76_vm0, %v1732_v19 }
 0x19d   :  { %v1426_v9 = vpop.f32.mrb[0].mxu0 }
 0x19e   :  { %v1135_v39 = vpop.f32.mrb[1].mxu0 }
 0x1a0   :  { %v1360_v41 = vpop.f32.mrb[0].mxu1 }
 0x1a1   :  { %v1523_v42 = vadd.f32 %v1426_v9, %v1360_v41  ;;  %v601_v22 = vpop.f32.mrb[1].mxu1 }
 0x1a2   :  { %v1524_v43 = vadd.f32 %v1135_v39, %v601_v22 }
 0x1a3   :  { %1147 = vadd.xlane.f32.xlu1 %v1523_v42 }
 0x1a4   :  { %1145 = vadd.xlane.f32.xlu0 %v1524_v43 }
 0x230   :  { %v1148_v44 = vpop.xlane.xlu1 %1147 }
 0x231   :  { %v1146_v26 = vpop.xlane.xlu0 %1145  ;;  %v1151_v45 = vmul.f32 0.0078125, %v1148_v44 }
 0x232   :  { %v1150_v46 = vmul.f32 0.0078125, %v1146_v26 }
 0x233   :  { %v1153_v40 = vsub.f32 %v1523_v42, %v1151_v45 }
 0x234   :  { %v1152_v47 = vsub.f32 %v1524_v43, %v1150_v46 }
 0x235   :  { %v1155_v49 = vmul.f32 %v1153_v40, %v1153_v40 }
 0x236   :  { %v1154_v48 = vmul.f32 %v1152_v47, %v1152_v47 }
 0x238   :  { %1156 = vadd.xlane.f32.xlu0 %v1154_v48 }
 0x23c   :  { %1158 = vadd.xlane.f32.xlu0 %v1155_v49 }
 0x2c5   :  { %v1157_v50 = vpop.xlane.xlu0 %1156 }
 0x2c6   :  { %v1160_v51 = vmul.f32 0.0078125, %v1157_v50 }
 0x2c8   :  { %v1162_v52 = vadd.f32 1e-08, %v1160_v51 }
 0x2c9   :  { %v1159_v53 = vpop.xlane.xlu0 %1158 }
 0x2ca   :  { %1553 = vrsqrt.f32 %v1162_v52  ;;  %v1161_v54 = vmul.f32 0.0078125, %v1159_v53 }
 0x2cc   :  { %v1163_v55 = vadd.f32 1e-08, %v1161_v54 }
 0x2ce   :  { %1555 = vrsqrt.f32 %v1163_v55 }
 0x2d4   :  { %v1554_v56 = vpop.eup %1553 }
 0x2d5   :  { %v1166_v58 = vmul.f32 %v1554_v56, %v1152_v47 }
 0x2d7   :  { %v1175_v60 = vmul.f32 %v1221_v57, %v1166_v58 }
 0x2d8   :  { %v1556_v61 = vpop.eup %1555 }
 0x2d9   :  { %v1167_v62 = vmul.f32 %v1556_v61, %v1153_v40  ;;  %v1184_v63 = vadd.f32 %v1222_v59, %v1175_v60 }
 0x2db   :  { %v1176_v0 = vmul.f32 %v1221_v57, %v1167_v62  ;;  %1186 = vst [vmem:[#allocation5] sm:$0xff] %v1184_v63 }
 0x2dd   :  { %v1185_v1 = vadd.f32 %v1222_v59, %v1176_v0 }
 0x2df   :  { %1187 = vst [vmem:[#allocation5 + $0x8] sm:$0xff] %v1185_v1 }
 0x2e0   :  { %1590 = shalt.err (!%p1587_p12)
}
 0x2e1   :  { %s1591_s30 = scalar_lea.hbm %s1818_s6, 256 }
 0x2e2   :  { %p1592_p13 = scmp.ne.s32.totalorder %s1818_s6, %s1591_s30  ;;  %p1595_p0 = scmp.lt.u32.totalorder %s1591_s30, %s1818_s6 }
 0x2e4   :  { %p1597_p1 = pnand %p1595_p0, %p1592_p13 }
 0x2e6   :  { %1600 = shalt.err (!%p1597_p1)
}
 0x2e7   :  { %1199 = dma.vmem_to_hbm [thread:$0]  %s1194_s28, 256, %s1818_s6, [#allocation4], %s1606_s7, %s1606_s7, %s1607_s8  }
 0x2e8   :  { %1603 = dma.done.wait [#allocation4], 256  }
 0x2e9   :  { %1604 = vsyncadd [#allocation4], 4294967040 }
 0x2ea   :  { %1203 = vsyncpa [#allocation3], 1 }
 0x2eb   :  { %1204 = vsyncpa [#allocation4], 1 }

</bundles_post_ra>
